<compile_context>
chip_gen: v7x
topology: tpu7x:2x2x1
jax: 0.10.0
libtpu: 0.0.40
codegen_flags: <defaults>
</compile_context>

<pallas_src>
import functools

import jax
import jax.numpy as jnp
from jax.experimental import pallas as pl
from jax.experimental.pallas import tpu as pltpu


def encoder_layer_kernel(x_ref, attn_mask_ref, kpm_ref, wqkv_ref, bqkv_ref, wo_ref,
                         w1_ref, b1_ref, w2_ref, evecs_ref, o_ref, *, num_heads, eps):
    _, S, E = x_ref.shape                      # one batch element per grid step
    H = num_heads
    hd = E // H
    bf16 = jnp.bfloat16

    x = x_ref[0]                               # (S, E) float32

    # ---- additive mask built in-kernel: attn_mask(S,S) OR this batch's padding row (1,S).
    # `!= 0` matches PyTorch's `.to(torch.bool)`; -inf sentinel matches PyTorch masked_fill
    # (fully-masked rows -> NaN, exactly like the reference module).
    masked = (attn_mask_ref[...] != 0.0) | (kpm_ref[0] != 0.0)       # (S, S)
    add_mask = jnp.where(masked, jnp.float32(-jnp.inf), jnp.float32(0.0))

    # ---- fused QKV: one lane-dense (S,E)@(E,3E) MXU matmul, bf16 operands, f32 accumulation.
    qkv = jnp.dot(x.astype(bf16), wqkv_ref[...].astype(bf16),
                  preferred_element_type=jnp.float32) + bqkv_ref[...]   # (S, 3E)
    q = qkv[:, 0 * E:1 * E]                    # query scaling already folded into wqkv/bqkv
    k = qkv[:, 1 * E:2 * E]
    v = qkv[:, 2 * E:3 * E]

    # ---- per-head attention (heads as the leading batch dim of the batched matmuls)
    q_h = jnp.transpose(q.reshape(S, H, hd), (1, 0, 2)).astype(bf16)    # (H, S, hd)
    k_h = jnp.transpose(k.reshape(S, H, hd), (1, 0, 2)).astype(bf16)
    v_h = jnp.transpose(v.reshape(S, H, hd), (1, 0, 2)).astype(bf16)

    s = jnp.einsum('hqd,hkd->hqk', q_h, k_h,
                   preferred_element_type=jnp.float32)                  # (H, S, S)
    s = s + add_mask[None, :, :]
    mx = jnp.max(s, axis=-1, keepdims=True)
    p = jnp.exp(s - mx)
    denom = jnp.sum(p, axis=-1, keepdims=True)
    # approx reciprocal on the EUP slot; small relative error vs exact divide (documented).
    w = p * pl.reciprocal(denom, approx=True)

    ctx = jnp.einsum('hqk,hkd->hqd', w.astype(bf16), v_h,
                     preferred_element_type=jnp.float32)                # (H, S, hd)
    # head concat is a free row-major reshape back to the lane-dense (S, E) layout
    ctx = jnp.transpose(ctx, (1, 0, 2)).reshape(S, E)

    # ---- output projection: single matmul contracting the full E (no per-head sums)
    attn = jnp.dot(ctx.astype(bf16), wo_ref[...].astype(bf16),
                   preferred_element_type=jnp.float32) + evecs_ref[0:1, :]

    # ---- residual + LayerNorm 1 (biased variance, eps inside sqrt, affine) in f32
    x1 = x + attn
    mu1 = jnp.mean(x1, axis=-1, keepdims=True)
    var1 = jnp.mean((x1 - mu1) ** 2, axis=-1, keepdims=True)
    x1 = (x1 - mu1) * jax.lax.rsqrt(var1 + eps) * evecs_ref[1:2, :] + evecs_ref[2:3, :]

    # ---- FFN: fc1 -> exact (erf) GELU -> fc2, bf16 matmul operands, f32 accumulation
    h1 = jnp.dot(x1.astype(bf16), w1_ref[...].astype(bf16),
                 preferred_element_type=jnp.float32) + b1_ref[...]
    h1 = 0.5 * h1 * (1.0 + jax.lax.erf(h1 * jnp.float32(2.0 ** -0.5)))
    h2 = jnp.dot(h1.astype(bf16), w2_ref[...].astype(bf16),
                 preferred_element_type=jnp.float32) + evecs_ref[3:4, :]

    # ---- residual + LayerNorm 2
    x2 = x1 + h2
    mu2 = jnp.mean(x2, axis=-1, keepdims=True)
    var2 = jnp.mean((x2 - mu2) ** 2, axis=-1, keepdims=True)
    out = (x2 - mu2) * jax.lax.rsqrt(var2 + eps) * evecs_ref[4:5, :] + evecs_ref[5:6, :]

    # ---- clamp epilogue: unconditional clip (identity for finite in-range values,
    # clips +/-inf, leaves NaN untouched) == PyTorch's conditional isinf/isnan clamp.
    clamp_value = jnp.float32(jnp.finfo(jnp.float32).max - 1000.0)
    o_ref[0] = jnp.clip(out, -clamp_value, clamp_value)


def pack_params(p, *, num_heads):
    """One-time packing of raw (in, out)-layout Linear weights into the kernel layout.
    Done OUTSIDE the per-call path (hoisted per perf review)."""
    E = p["wq"].shape[0]
    hd = E // num_heads
    scaling = float(hd) ** (-0.5)
    return {
        # query scaling folded into both wq and bq (PyTorch scales q AFTER the bias add)
        "wqkv": jnp.concatenate([p["wq"] * scaling, p["wk"], p["wv"]], axis=1),   # (E, 3E)
        "bqkv": jnp.concatenate([p["bq"] * scaling, p["bk"], p["bv"]], axis=1),   # (1, 3E)
        "wo": p["wo"],                                                            # (E, E)
        "w1": p["w1"], "b1": p["b1"], "w2": p["w2"],
        # [out_proj bias, ln1 gamma, ln1 beta, fc2 bias, ln2 gamma, ln2 beta]
        "evecs": jnp.concatenate([p["bo"], p["g1"], p["be1"],
                                  p["b2"], p["g2"], p["be2"]], axis=0),           # (6, E)
    }


def encoder_layer(x_sbe, attn_mask, key_padding_mask, packed, *, num_heads, eps=1e-5):
    """x_sbe: (seq, batch, embed) float32 (PyTorch layout). attn_mask: (S, S) 0/1;
    key_padding_mask: (B, S) 0/1. Returns (S, B, E) float32."""
    S, B, E = x_sbe.shape
    FF = packed["w1"].shape[1]

    x_bse = jnp.transpose(x_sbe, (1, 0, 2))          # (B, S, E): batch-major for the grid
    kpm = key_padding_mask.reshape(B, 1, S)          # per-batch padding row blocks

    kernel = functools.partial(encoder_layer_kernel, num_heads=num_heads, eps=eps)

    out_bse = pl.pallas_call(
        kernel,
        out_shape=jax.ShapeDtypeStruct((B, S, E), jnp.float32),
        grid=(B,),
        in_specs=[
            pl.BlockSpec((1, S, E), lambda b: (b, 0, 0)),        # x, this batch element
            pl.BlockSpec((S, S), lambda b: (0, 0)),              # attn_mask (VMEM-resident)
            pl.BlockSpec((1, 1, S), lambda b: (b, 0, 0)),        # key_padding_mask row
            pl.BlockSpec((E, 3 * E), lambda b: (0, 0)),          # packed QKV weight
            pl.BlockSpec((1, 3 * E), lambda b: (0, 0)),          # packed QKV bias
            pl.BlockSpec((E, E), lambda b: (0, 0)),              # out-proj weight
            pl.BlockSpec((E, FF), lambda b: (0, 0)),             # fc1 weight
            pl.BlockSpec((1, FF), lambda b: (0, 0)),             # fc1 bias
            pl.BlockSpec((FF, E), lambda b: (0, 0)),             # fc2 weight
            pl.BlockSpec((6, E), lambda b: (0, 0)),              # packed E-length vectors
        ],
        out_specs=pl.BlockSpec((1, S, E), lambda b: (b, 0, 0)),
        compiler_params=pltpu.CompilerParams(
            dimension_semantics=("parallel",)),                  # megacore sharding on v7x
    )(x_bse, attn_mask, kpm, packed["wqkv"], packed["bqkv"], packed["wo"],
      packed["w1"], packed["b1"], packed["w2"], packed["evecs"])

    return jnp.transpose(out_bse, (1, 0, 2))                     # back to (S, B, E)


def init_params(key, embed_dim, ffn_dim):
    ks = jax.random.split(key, 12)
    n = lambda k, shape, scale=0.02: (scale * jax.random.normal(k, shape)).astype(jnp.float32)
    # Linear weights stored pre-transposed to (in, out) so the kernel does x @ W.
    return {
        "wq": n(ks[0], (embed_dim, embed_dim)), "bq": n(ks[1], (1, embed_dim)),
        "wk": n(ks[2], (embed_dim, embed_dim)), "bk": n(ks[3], (1, embed_dim)),
        "wv": n(ks[4], (embed_dim, embed_dim)), "bv": n(ks[5], (1, embed_dim)),
        "wo": n(ks[6], (embed_dim, embed_dim)), "bo": n(ks[7], (1, embed_dim)),
        "g1": jnp.ones((1, embed_dim), jnp.float32), "be1": jnp.zeros((1, embed_dim), jnp.float32),
        "w1": n(ks[8], (embed_dim, ffn_dim)), "b1": n(ks[9], (1, ffn_dim)),
        "w2": n(ks[10], (ffn_dim, embed_dim)), "b2": n(ks[11], (1, embed_dim)),
        "g2": jnp.ones((1, embed_dim), jnp.float32), "be2": jnp.zeros((1, embed_dim), jnp.float32),
    }


if __name__ == "__main__":
    # config: n_embed=32, n_head=4, ffn_dim=64; seq=8, batch=2; dropout is a no-op (eval mode)
    S, B, E, H, FF = 8, 2, 32, 4, 64
    key = jax.random.PRNGKey(0)
    kx, kp = jax.random.split(key)

    x = jax.random.normal(kx, (S, B, E), dtype=jnp.float32)      # (seq, batch, embed)

    # attn_mask: (S, S), nonzero = masked (upper-triangular causal-ish mask for the test)
    attn_mask = jnp.triu(jnp.ones((S, S), jnp.float32), k=1)
    # key_padding_mask: (B, S), nonzero = padding; mask out the last key position of batch 1
    pad_mask = jnp.zeros((B, S), jnp.float32).at[1, S - 1].set(1.0)

    raw_params = init_params(kp, E, FF)
    packed = pack_params(raw_params, num_heads=H)                # one-time packing

    out = encoder_layer(x, attn_mask, pad_mask, packed, num_heads=H)
    out = jax.block_until_ready(out)
    assert out.shape == (S, B, E) and out.dtype == jnp.float32
    print("KERNEL_OK")
</pallas_src>

<mosaic_0001>
module attributes {stable_mosaic.version = 11 : i64} {
  func.func @encoder_layer_kernel(%arg0: i32, %arg1: memref<1x8x32xf32, #tpu.memory_space<vmem>>, %arg2: memref<8x8xf32, #tpu.memory_space<vmem>>, %arg3: memref<1x1x8xf32, #tpu.memory_space<vmem>>, %arg4: memref<32x96xf32, #tpu.memory_space<vmem>>, %arg5: memref<1x96xf32, #tpu.memory_space<vmem>>, %arg6: memref<32x32xf32, #tpu.memory_space<vmem>>, %arg7: memref<32x64xf32, #tpu.memory_space<vmem>>, %arg8: memref<1x64xf32, #tpu.memory_space<vmem>>, %arg9: memref<64x32xf32, #tpu.memory_space<vmem>>, %arg10: memref<6x32xf32, #tpu.memory_space<vmem>>, %arg11: memref<1x8x32xf32, #tpu.memory_space<vmem>>) attributes {dimension_semantics = [#tpu.dimension_semantics<parallel>], iteration_bounds = array<i64: 2>, scalar_prefetch = 0 : i64, scratch_operands = 0 : i64, tpu.core_type = #tpu.core_type<tc>, window_params = [{transform_indices = @transform_0, window_bounds = array<i64: 1, 8, 32>}, {pipeline_mode = #tpu.pipeline_mode<synchronous>, transform_indices = @transform_1, window_bounds = array<i64: 8, 8>}, {transform_indices = @transform_2, window_bounds = array<i64: 1, 1, 8>}, {pipeline_mode = #tpu.pipeline_mode<synchronous>, transform_indices = @transform_3, window_bounds = array<i64: 32, 96>}, {pipeline_mode = #tpu.pipeline_mode<synchronous>, transform_indices = @transform_4, window_bounds = array<i64: 1, 96>}, {pipeline_mode = #tpu.pipeline_mode<synchronous>, transform_indices = @transform_5, window_bounds = array<i64: 32, 32>}, {pipeline_mode = #tpu.pipeline_mode<synchronous>, transform_indices = @transform_6, window_bounds = array<i64: 32, 64>}, {pipeline_mode = #tpu.pipeline_mode<synchronous>, transform_indices = @transform_7, window_bounds = array<i64: 1, 64>}, {pipeline_mode = #tpu.pipeline_mode<synchronous>, transform_indices = @transform_8, window_bounds = array<i64: 64, 32>}, {pipeline_mode = #tpu.pipeline_mode<synchronous>, transform_indices = @transform_9, window_bounds = array<i64: 6, 32>}, {transform_indices = @transform_10, window_bounds = array<i64: 1, 8, 32>}]} {
    %c0 = arith.constant 0 : index
    %c0_0 = arith.constant 0 : index
    %c0_1 = arith.constant 0 : index
    %0 = vector.load %arg1[%c0, %c0_0, %c0_1] : memref<1x8x32xf32, #tpu.memory_space<vmem>>, vector<1x8x32xf32>
    %1 = vector.shape_cast %0 : vector<1x8x32xf32> to vector<8x32xf32>
    %c0_2 = arith.constant 0 : index
    %c0_3 = arith.constant 0 : index
    %2 = vector.load %arg2[%c0_2, %c0_3] : memref<8x8xf32, #tpu.memory_space<vmem>>, vector<8x8xf32>
    %cst = arith.constant 0.000000e+00 : f32
    %3 = vector.broadcast %cst : f32 to vector<8x8xf32>
    %4 = arith.cmpf one, %2, %3 : vector<8x8xf32>
    %c0_4 = arith.constant 0 : index
    %c0_5 = arith.constant 0 : index
    %c0_6 = arith.constant 0 : index
    %5 = vector.load %arg3[%c0_4, %c0_5, %c0_6] : memref<1x1x8xf32, #tpu.memory_space<vmem>>, vector<1x1x8xf32>
    %6 = vector.shape_cast %5 : vector<1x1x8xf32> to vector<1x8xf32>
    %cst_7 = arith.constant 0.000000e+00 : f32
    %7 = vector.broadcast %cst_7 : f32 to vector<1x8xf32>
    %8 = arith.cmpf one, %6, %7 : vector<1x8xf32>
    %9 = vector.broadcast %8 : vector<1x8xi1> to vector<8x8xi1>
    %10 = arith.ori %4, %9 : vector<8x8xi1>
    %cst_8 = arith.constant 0xFF800000 : f32
    %cst_9 = arith.constant 0.000000e+00 : f32
    %11 = vector.broadcast %cst_8 : f32 to vector<8x8xf32>
    %12 = vector.broadcast %cst_9 : f32 to vector<8x8xf32>
    %13 = arith.select %10, %11, %12 : vector<8x8xi1>, vector<8x8xf32>
    %14 = arith.truncf %1 : vector<8x32xf32> to vector<8x32xbf16>
    %c0_10 = arith.constant 0 : index
    %c0_11 = arith.constant 0 : index
    %15 = vector.load %arg4[%c0_10, %c0_11] : memref<32x96xf32, #tpu.memory_space<vmem>>, vector<32x96xf32>
    %16 = arith.truncf %15 : vector<32x96xf32> to vector<32x96xbf16>
    %cst_12 = arith.constant dense<0.000000e+00> : vector<8x96xf32>
    %17 = tpu.matmul %14, %16, %cst_12 {dimension_numbers = #tpu.dot_dimension_numbers<[1], [0], [0], [1], [0, 0, 1, 1], [], []>} : vector<8x32xbf16>, vector<32x96xbf16>, vector<8x96xf32> -> vector<8x96xf32>
    %c0_13 = arith.constant 0 : index
    %c0_14 = arith.constant 0 : index
    %18 = vector.load %arg5[%c0_13, %c0_14] : memref<1x96xf32, #tpu.memory_space<vmem>>, vector<1x96xf32>
    %19 = vector.broadcast %18 : vector<1x96xf32> to vector<8x96xf32>
    %20 = arith.addf %17, %19 : vector<8x96xf32>
    %21 = vector.extract_strided_slice %20 {offsets = [0, 0], sizes = [8, 32], strides = [1, 1]} : vector<8x96xf32> to vector<8x32xf32>
    %22 = vector.extract_strided_slice %20 {offsets = [0, 32], sizes = [8, 32], strides = [1, 1]} : vector<8x96xf32> to vector<8x32xf32>
    %23 = vector.extract_strided_slice %20 {offsets = [0, 64], sizes = [8, 32], strides = [1, 1]} : vector<8x96xf32> to vector<8x32xf32>
    %24 = vector.shape_cast %21 : vector<8x32xf32> to vector<8x4x8xf32>
    %25 = tpu.transpose %24, [1, 0, 2] : vector<8x4x8xf32> -> vector<4x8x8xf32>
    %26 = arith.truncf %25 : vector<4x8x8xf32> to vector<4x8x8xbf16>
    %27 = vector.shape_cast %22 : vector<8x32xf32> to vector<8x4x8xf32>
    %28 = tpu.transpose %27, [1, 0, 2] : vector<8x4x8xf32> -> vector<4x8x8xf32>
    %29 = arith.truncf %28 : vector<4x8x8xf32> to vector<4x8x8xbf16>
    %30 = vector.shape_cast %23 : vector<8x32xf32> to vector<8x4x8xf32>
    %31 = tpu.transpose %30, [1, 0, 2] : vector<8x4x8xf32> -> vector<4x8x8xf32>
    %32 = arith.truncf %31 : vector<4x8x8xf32> to vector<4x8x8xbf16>
    "tpu.trace_start"() <{level = 10 : i32, message = "hqd,hkd->hqk"}> : () -> ()
    %cst_15 = arith.constant dense<0.000000e+00> : vector<4x8x8xf32>
    %33 = tpu.matmul %26, %29, %cst_15 {dimension_numbers = #tpu.dot_dimension_numbers<[2], [2], [1], [1], [0, 0, 0, 1, 1, 1], [0], [0]>} : vector<4x8x8xbf16>, vector<4x8x8xbf16>, vector<4x8x8xf32> -> vector<4x8x8xf32>
    "tpu.trace_stop"() : () -> ()
    %34 = vector.shape_cast %13 : vector<8x8xf32> to vector<1x8x8xf32>
    %35 = vector.broadcast %34 : vector<1x8x8xf32> to vector<4x8x8xf32>
    %36 = arith.addf %33, %35 : vector<4x8x8xf32>
    %cst_16 = arith.constant dense<0xFF800000> : vector<4x8xf32>
    %37 = vector.multi_reduction <maximumf>, %36, %cst_16 [2] : vector<4x8x8xf32> to vector<4x8xf32>
    %38 = vector.shape_cast %37 : vector<4x8xf32> to vector<4x8x1xf32>
    %39 = vector.broadcast %38 : vector<4x8x1xf32> to vector<4x8x8xf32>
    %40 = arith.subf %36, %39 : vector<4x8x8xf32>
    %41 = math.exp %40 : vector<4x8x8xf32>
    %cst_17 = arith.constant dense<0.000000e+00> : vector<4x8xf32>
    %42 = vector.multi_reduction <add>, %41, %cst_17 [2] : vector<4x8x8xf32> to vector<4x8xf32>
    %43 = vector.shape_cast %42 : vector<4x8xf32> to vector<4x8x1xf32>
    %44 = tpu.reciprocal %43 {approx = true} : vector<4x8x1xf32> -> vector<4x8x1xf32>
    %45 = vector.broadcast %44 : vector<4x8x1xf32> to vector<4x8x8xf32>
    %46 = arith.mulf %41, %45 : vector<4x8x8xf32>
    %47 = arith.truncf %46 : vector<4x8x8xf32> to vector<4x8x8xbf16>
    "tpu.trace_start"() <{level = 10 : i32, message = "hqk,hkd->hqd"}> : () -> ()
    %cst_18 = arith.constant dense<0.000000e+00> : vector<4x8x8xf32>
    %48 = tpu.matmul %47, %32, %cst_18 {dimension_numbers = #tpu.dot_dimension_numbers<[2], [1], [1], [2], [0, 0, 0, 1, 1, 2], [0], [0]>} : vector<4x8x8xbf16>, vector<4x8x8xbf16>, vector<4x8x8xf32> -> vector<4x8x8xf32>
    "tpu.trace_stop"() : () -> ()
    %49 = tpu.transpose %48, [1, 0, 2] : vector<4x8x8xf32> -> vector<8x4x8xf32>
    %50 = vector.shape_cast %49 : vector<8x4x8xf32> to vector<8x32xf32>
    %51 = arith.truncf %50 : vector<8x32xf32> to vector<8x32xbf16>
    %c0_19 = arith.constant 0 : index
    %c0_20 = arith.constant 0 : index
    %52 = vector.load %arg6[%c0_19, %c0_20] : memref<32x32xf32, #tpu.memory_space<vmem>>, vector<32x32xf32>
    %53 = arith.truncf %52 : vector<32x32xf32> to vector<32x32xbf16>
    %cst_21 = arith.constant dense<0.000000e+00> : vector<8x32xf32>
    %54 = tpu.matmul %51, %53, %cst_21 {dimension_numbers = #tpu.dot_dimension_numbers<[1], [0], [0], [1], [0, 0, 1, 1], [], []>} : vector<8x32xbf16>, vector<32x32xbf16>, vector<8x32xf32> -> vector<8x32xf32>
    %c0_22 = arith.constant 0 : index
    %c0_23 = arith.constant 0 : index
    %55 = vector.load %arg10[%c0_22, %c0_23] : memref<6x32xf32, #tpu.memory_space<vmem>>, vector<1x32xf32>
    %56 = vector.broadcast %55 : vector<1x32xf32> to vector<8x32xf32>
    %57 = arith.addf %54, %56 : vector<8x32xf32>
    %58 = arith.addf %1, %57 : vector<8x32xf32>
    %cst_24 = arith.constant dense<0.000000e+00> : vector<8xf32>
    %59 = vector.multi_reduction <add>, %58, %cst_24 [1] : vector<8x32xf32> to vector<8xf32>
    %60 = vector.shape_cast %59 : vector<8xf32> to vector<8x1xf32>
    %cst_25 = arith.constant 3.200000e+01 : f32
    %61 = vector.broadcast %cst_25 : f32 to vector<8x1xf32>
    %62 = arith.divf %60, %61 : vector<8x1xf32>
    %63 = vector.broadcast %62 : vector<8x1xf32> to vector<8x32xf32>
    %64 = arith.subf %58, %63 : vector<8x32xf32>
    %65 = arith.mulf %64, %64 : vector<8x32xf32>
    %cst_26 = arith.constant dense<0.000000e+00> : vector<8xf32>
    %66 = vector.multi_reduction <add>, %65, %cst_26 [1] : vector<8x32xf32> to vector<8xf32>
    %67 = vector.shape_cast %66 : vector<8xf32> to vector<8x1xf32>
    %cst_27 = arith.constant 3.200000e+01 : f32
    %68 = vector.broadcast %cst_27 : f32 to vector<8x1xf32>
    %69 = arith.divf %67, %68 : vector<8x1xf32>
    %70 = vector.broadcast %62 : vector<8x1xf32> to vector<8x32xf32>
    %71 = arith.subf %58, %70 : vector<8x32xf32>
    %cst_28 = arith.constant 9.99999974E-6 : f32
    %72 = vector.broadcast %cst_28 : f32 to vector<8x1xf32>
    %73 = arith.addf %69, %72 : vector<8x1xf32>
    %74 = math.rsqrt %73 : vector<8x1xf32>
    %75 = vector.broadcast %74 : vector<8x1xf32> to vector<8x32xf32>
    %76 = arith.mulf %71, %75 : vector<8x32xf32>
    %c1 = arith.constant 1 : index
    %c0_29 = arith.constant 0 : index
    %77 = vector.load %arg10[%c1, %c0_29] : memref<6x32xf32, #tpu.memory_space<vmem>>, vector<1x32xf32>
    %78 = vector.broadcast %77 : vector<1x32xf32> to vector<8x32xf32>
    %79 = arith.mulf %76, %78 : vector<8x32xf32>
    %c2 = arith.constant 2 : index
    %c0_30 = arith.constant 0 : index
    %80 = vector.load %arg10[%c2, %c0_30] : memref<6x32xf32, #tpu.memory_space<vmem>>, vector<1x32xf32>
    %81 = vector.broadcast %80 : vector<1x32xf32> to vector<8x32xf32>
    %82 = arith.addf %79, %81 : vector<8x32xf32>
    %83 = arith.truncf %82 : vector<8x32xf32> to vector<8x32xbf16>
    %c0_31 = arith.constant 0 : index
    %c0_32 = arith.constant 0 : index
    %84 = vector.load %arg7[%c0_31, %c0_32] : memref<32x64xf32, #tpu.memory_space<vmem>>, vector<32x64xf32>
    %85 = arith.truncf %84 : vector<32x64xf32> to vector<32x64xbf16>
    %cst_33 = arith.constant dense<0.000000e+00> : vector<8x64xf32>
    %86 = tpu.matmul %83, %85, %cst_33 {dimension_numbers = #tpu.dot_dimension_numbers<[1], [0], [0], [1], [0, 0, 1, 1], [], []>} : vector<8x32xbf16>, vector<32x64xbf16>, vector<8x64xf32> -> vector<8x64xf32>
    %c0_34 = arith.constant 0 : index
    %c0_35 = arith.constant 0 : index
    %87 = vector.load %arg8[%c0_34, %c0_35] : memref<1x64xf32, #tpu.memory_space<vmem>>, vector<1x64xf32>
    %88 = vector.broadcast %87 : vector<1x64xf32> to vector<8x64xf32>
    %89 = arith.addf %86, %88 : vector<8x64xf32>
    %cst_36 = arith.constant 5.000000e-01 : f32
    %90 = vector.broadcast %cst_36 : f32 to vector<8x64xf32>
    %91 = arith.mulf %90, %89 : vector<8x64xf32>
    %cst_37 = arith.constant 0.707106769 : f32
    %92 = vector.broadcast %cst_37 : f32 to vector<8x64xf32>
    %93 = arith.mulf %89, %92 : vector<8x64xf32>
    %94 = math.erf %93 : vector<8x64xf32>
    %cst_38 = arith.constant 1.000000e+00 : f32
    %95 = vector.broadcast %cst_38 : f32 to vector<8x64xf32>
    %96 = arith.addf %95, %94 : vector<8x64xf32>
    %97 = arith.mulf %91, %96 : vector<8x64xf32>
    %98 = arith.truncf %97 : vector<8x64xf32> to vector<8x64xbf16>
    %c0_39 = arith.constant 0 : index
    %c0_40 = arith.constant 0 : index
    %99 = vector.load %arg9[%c0_39, %c0_40] : memref<64x32xf32, #tpu.memory_space<vmem>>, vector<64x32xf32>
    %100 = arith.truncf %99 : vector<64x32xf32> to vector<64x32xbf16>
    %cst_41 = arith.constant dense<0.000000e+00> : vector<8x32xf32>
    %101 = tpu.matmul %98, %100, %cst_41 {dimension_numbers = #tpu.dot_dimension_numbers<[1], [0], [0], [1], [0, 0, 1, 1], [], []>} : vector<8x64xbf16>, vector<64x32xbf16>, vector<8x32xf32> -> vector<8x32xf32>
    %c3 = arith.constant 3 : index
    %c0_42 = arith.constant 0 : index
    %102 = vector.load %arg10[%c3, %c0_42] : memref<6x32xf32, #tpu.memory_space<vmem>>, vector<1x32xf32>
    %103 = vector.broadcast %102 : vector<1x32xf32> to vector<8x32xf32>
    %104 = arith.addf %101, %103 : vector<8x32xf32>
    %105 = arith.addf %82, %104 : vector<8x32xf32>
    %cst_43 = arith.constant dense<0.000000e+00> : vector<8xf32>
    %106 = vector.multi_reduction <add>, %105, %cst_43 [1] : vector<8x32xf32> to vector<8xf32>
    %107 = vector.shape_cast %106 : vector<8xf32> to vector<8x1xf32>
    %cst_44 = arith.constant 3.200000e+01 : f32
    %108 = vector.broadcast %cst_44 : f32 to vector<8x1xf32>
    %109 = arith.divf %107, %108 : vector<8x1xf32>
    %110 = vector.broadcast %109 : vector<8x1xf32> to vector<8x32xf32>
    %111 = arith.subf %105, %110 : vector<8x32xf32>
    %112 = arith.mulf %111, %111 : vector<8x32xf32>
    %cst_45 = arith.constant dense<0.000000e+00> : vector<8xf32>
    %113 = vector.multi_reduction <add>, %112, %cst_45 [1] : vector<8x32xf32> to vector<8xf32>
    %114 = vector.shape_cast %113 : vector<8xf32> to vector<8x1xf32>
    %cst_46 = arith.constant 3.200000e+01 : f32
    %115 = vector.broadcast %cst_46 : f32 to vector<8x1xf32>
    %116 = arith.divf %114, %115 : vector<8x1xf32>
    %117 = vector.broadcast %109 : vector<8x1xf32> to vector<8x32xf32>
    %118 = arith.subf %105, %117 : vector<8x32xf32>
    %cst_47 = arith.constant 9.99999974E-6 : f32
    %119 = vector.broadcast %cst_47 : f32 to vector<8x1xf32>
    %120 = arith.addf %116, %119 : vector<8x1xf32>
    %121 = math.rsqrt %120 : vector<8x1xf32>
    %122 = vector.broadcast %121 : vector<8x1xf32> to vector<8x32xf32>
    %123 = arith.mulf %118, %122 : vector<8x32xf32>
    %c4 = arith.constant 4 : index
    %c0_48 = arith.constant 0 : index
    %124 = vector.load %arg10[%c4, %c0_48] : memref<6x32xf32, #tpu.memory_space<vmem>>, vector<1x32xf32>
    %125 = vector.broadcast %124 : vector<1x32xf32> to vector<8x32xf32>
    %126 = arith.mulf %123, %125 : vector<8x32xf32>
    %c5 = arith.constant 5 : index
    %c0_49 = arith.constant 0 : index
    %127 = vector.load %arg10[%c5, %c0_49] : memref<6x32xf32, #tpu.memory_space<vmem>>, vector<1x32xf32>
    %128 = vector.broadcast %127 : vector<1x32xf32> to vector<8x32xf32>
    %129 = arith.addf %126, %128 : vector<8x32xf32>
    %cst_50 = arith.constant 0.000000e+00 : f32
    %cst_51 = arith.constant 3.40282347E+38 : f32
    %130 = arith.subf %cst_50, %cst_51 : f32
    %cst_52 = arith.constant 3.40282347E+38 : f32
    %131 = vector.broadcast %130 : f32 to vector<8x32xf32>
    %132 = arith.maximumf %131, %129 : vector<8x32xf32>
    %133 = vector.broadcast %cst_52 : f32 to vector<8x32xf32>
    %134 = arith.minimumf %133, %132 : vector<8x32xf32>
    %c0_53 = arith.constant 0 : index
    %c0_54 = arith.constant 0 : index
    %c0_55 = arith.constant 0 : index
    %135 = vector.load %arg11[%c0_53, %c0_54, %c0_55] : memref<1x8x32xf32, #tpu.memory_space<vmem>>, vector<1x8x32xf32>
    %136 = vector.shape_cast %135 : vector<1x8x32xf32> to vector<8x32xf32>
    %137 = vector.shape_cast %134 : vector<8x32xf32> to vector<1x8x32xf32>
    tpu.vector_store %arg11[%c0_53, %c0_54, %c0_55], %137 {strides = array<i32>} : memref<1x8x32xf32, #tpu.memory_space<vmem>>, vector<1x8x32xf32>,
    return
  }
  func.func @transform_0(%arg0: i32) -> (i32, i32, i32) {
    %c0_i32 = arith.constant 0 : i32
    %c0_i32_0 = arith.constant 0 : i32
    %c0_i32_1 = arith.constant 0 : i32
    return %arg0, %c0_i32, %c0_i32_0 : i32, i32, i32
  }
  func.func @transform_1(%arg0: i32) -> (i32, i32) {
    %c0_i32 = arith.constant 0 : i32
    %c0_i32_0 = arith.constant 0 : i32
    %c0_i32_1 = arith.constant 0 : i32
    return %c0_i32, %c0_i32_0 : i32, i32
  }
  func.func @transform_2(%arg0: i32) -> (i32, i32, i32) {
    %c0_i32 = arith.constant 0 : i32
    %c0_i32_0 = arith.constant 0 : i32
    %c0_i32_1 = arith.constant 0 : i32
    return %arg0, %c0_i32, %c0_i32_0 : i32, i32, i32
  }
  func.func @transform_3(%arg0: i32) -> (i32, i32) {
    %c0_i32 = arith.constant 0 : i32
    %c0_i32_0 = arith.constant 0 : i32
    %c0_i32_1 = arith.constant 0 : i32
    return %c0_i32, %c0_i32_0 : i32, i32
  }
  func.func @transform_4(%arg0: i32) -> (i32, i32) {
    %c0_i32 = arith.constant 0 : i32
    %c0_i32_0 = arith.constant 0 : i32
    %c0_i32_1 = arith.constant 0 : i32
    return %c0_i32, %c0_i32_0 : i32, i32
  }
  func.func @transform_5(%arg0: i32) -> (i32, i32) {
    %c0_i32 = arith.constant 0 : i32
    %c0_i32_0 = arith.constant 0 : i32
    %c0_i32_1 = arith.constant 0 : i32
    return %c0_i32, %c0_i32_0 : i32, i32
  }
  func.func @transform_6(%arg0: i32) -> (i32, i32) {
    %c0_i32 = arith.constant 0 : i32
    %c0_i32_0 = arith.constant 0 : i32
    %c0_i32_1 = arith.constant 0 : i32
    return %c0_i32, %c0_i32_0 : i32, i32
  }
  func.func @transform_7(%arg0: i32) -> (i32, i32) {
    %c0_i32 = arith.constant 0 : i32
    %c0_i32_0 = arith.constant 0 : i32
    %c0_i32_1 = arith.constant 0 : i32
    return %c0_i32, %c0_i32_0 : i32, i32
  }
  func.func @transform_8(%arg0: i32) -> (i32, i32) {
    %c0_i32 = arith.constant 0 : i32
    %c0_i32_0 = arith.constant 0 : i32
    %c0_i32_1 = arith.constant 0 : i32
    return %c0_i32, %c0_i32_0 : i32, i32
  }
  func.func @transform_9(%arg0: i32) -> (i32, i32) {
    %c0_i32 = arith.constant 0 : i32
    %c0_i32_0 = arith.constant 0 : i32
    %c0_i32_1 = arith.constant 0 : i32
    return %c0_i32, %c0_i32_0 : i32, i32
  }
  func.func @transform_10(%arg0: i32) -> (i32, i32, i32) {
    %c0_i32 = arith.constant 0 : i32
    %c0_i32_0 = arith.constant 0 : i32
    %c0_i32_1 = arith.constant 0 : i32
    return %arg0, %c0_i32, %c0_i32_0 : i32, i32, i32
  }
}

</mosaic_0001>

<bundles_post_ra>
// kernel: tpu_custom_call.1
= control target key start
LH: loop header
LB: loop body
LE: loop exit
PB: predicated region body
PF: predicated region fallthrough
CT: control target
= control target key end

     0   :  { %s2778_s0 = inlined_call_operand.hbm [shape: f32[2,8,32], index: 0, kind: input, shape index: {}]   ;;  %s2779_s1 = inlined_call_operand.hbm [shape: f32[8,8], index: 1, kind: input, shape index: {}]   ;;  %s2780_s2 = inlined_call_operand.vmem [shape: f32[2,1,8], index: 2, kind: input, shape index: {}]   ;;  %s2781_s3 = inlined_call_operand.vmem [shape: f32[32,96], index: 3, kind: input, shape index: {}]   ;;  %s2782_s4 = inlined_call_operand.vmem [shape: f32[1,96], index: 4, kind: input, shape index: {}]   ;;  %s2783_s5 = inlined_call_operand.vmem [shape: f32[32,32], index: 5, kind: input, shape index: {}]   ;;  %s2784_s6 = inlined_call_operand.vmem [shape: f32[32,64], index: 6, kind: input, shape index: {}]   ;;  %s2785_s7 = inlined_call_operand.vmem [shape: f32[1,64], index: 7, kind: input, shape index: {}]   ;;  %s2786_s8 = inlined_call_operand.vmem [shape: f32[64,32], index: 8, kind: input, shape index: {}]   ;;  %s2787_s9 = inlined_call_operand.vmem [shape: f32[6,32], index: 9, kind: input, shape index: {}]   ;;  %s2788_s10 = inlined_call_operand.hbm [shape: f32[2,8,32], index: 10, kind: output, shape index: {}]  }
   0x1   :  { %2794 = sst [smem:[#allocation12_spill]] %s2779_s1 }
   0x2   :  { %15 = vsyncpa [#allocation3], 0 }
   0x3   :  { %17 = vsyncpa [#allocation3 + $0x1], 0 }
   0x4   :  { %18 = vsyncpa [#allocation6], 0 }
   0x5   :  { %19 = vsyncpa [#allocation4], 0 }
   0x6   :  { %21 = vsyncpa [#allocation4 + $0x1], 0  ;;  %s2287_s13 = smov 0   ;;  %s2289_s14 = smov 0  }
   0x7   :  { %s2291_s15 = smov 0   ;;  %s2293_s16 = smov 0  }
   0x8 LB: > { %s2308_s17 = sadd.s32 4294967295, %s2214_s16   ;;  %s1837_s18 = sadd.s32 4294967294, %s2214_s16   ;;  %s2214_s16 = sphi %s2293_s16, %s2814_s16   ;;  %s2210_s15 = sphi %s2291_s15, %s2817_s15   ;;  %s2206_s14 = sphi %s2289_s14, %s2816_s14   ;;  %s2202_s13 = sphi %s2287_s13, %s2815_s13  }
   0x9   : > { %p47_p0 = scmp.ne.s32.totalorder %s2206_s14, %s2202_s13  ;;  %p2791_p1 = scmp.eq.s32.totalorder %s2308_s17, 0 }
   0xa   : > { %p271_p3 = scmp.eq.s32.totalorder %s1837_s18, 1  ;;  %p1838_p5 = scmp.ge.s32.totalorder %s2214_s16, 1 }
   0xb   : > { %p2317_p4 = por %p2791_p1, %p47_p0  ;;  %p278_p7 = scmp.lt.s32.totalorder %s2214_s16, 3 }
   0xc   : > { %p2322_p6 = por %p271_p3, %p47_p0  ;;  %s2216_s22 = smov [#allocation5]  }
   0xd   : > { %s2795_s19 = scalar_select %p2317_p4, 1, 0 }
   0xe   : > { %s2796_s20 = scalar_select %p2322_p6, 1, 0 }
   0xf   : > { %p2327_p8 = pnand %p1838_p5, %p278_p7  ;;  %s291_s23 = sshll.u32 %s2216_s22, 4  ;;  %s292_s23 = int_to_ptr.vmem [resolvable:$true] %s291_s23 }
  0x10   : > { %s2335_s24 = sadd.s32 1, %s2214_s16   ;;  %s34_s28 = sadd.s32 1, %s2210_s15 }
  0x11   : > { %s2797_s21 = scalar_select %p2327_p8, 1, 0 }
  0x12   : > { %p2002_p10 = pneg %p2327_p8  ;;  %2798 = sst [smem:[#allocation11_spill]] %s2335_s24 }
  0x13   : > { %s31_s26 = ssub.s32 %s2214_s16, %s2335_s24  ;;  %s2801_s1 = sld [smem:[#allocation12_spill]] }
  0x14   : > { %p2339_p11 = pnand %p2002_p10, %p2791_p1  ;;  %p2345_p12 = scmp.eq.s32.totalorder %s31_s26, 0 }
  0x16   : > { %s2800_s27 = scalar_select %p2345_p12, 1, 0 }
  0x17   : > { %p2088_p3 = pneg %p2339_p11 }
  0x19   : > { %s2086_s11 = scalar_lea.hbm %s2801_s1, 128 }
  0x1a   : > { %p2087_p0 = scmp.ne.s32.totalorder %s2801_s1, %s2086_s11  ;;  %p2093_p10 = scmp.lt.u32.totalorder %s2086_s11, %s2801_s1 }
  0x1c   : > { %p2089_p5 = pnand %p2088_p3, %p2087_p0 }
  0x1e   : > { %p2090_p7 = pneg %p2089_p5 }
  0x20   : > { %p2095_p9 = pnand %p2093_p10, %p2090_p7 }
  0x22   : > { %2098 = shalt.err (!%p2095_p9)
}
  0x23   : > { %s2099_s26 = scalar_lea.vmem %s292_s23, 128  ;;  %p2107_p6 = scmp.lt.s32.totalorder %s292_s23, %s292_s23 }
  0x24   : > { %p2100_p1 = scmp.ne.s32.totalorder %s292_s23, %s2099_s26  ;;  %p2108_p4 = scmp.lt.s32.totalorder %s2099_s26, %s2099_s26 }
  0x26   : > { %p2102_p2 = pnand %p2100_p1, %p2088_p3  ;;  %p2109_p8 = por %p2108_p4, %p2107_p6 }
  0x28   : > { %p2103_p13 = pneg %p2102_p2 }
  0x2a   : > { %p2110_p12 = pnand %p2109_p8, %p2103_p13 }
  0x2c   : > { %2113 = shalt.err (!%p2110_p12)
}
  0x2d   : > { %2005 = dma.hbm_to_vmem [thread:$0]  (!%p2339_p11), %s2801_s1, 128, %s292_s23, [#allocation6]  }
  0x2e   : > { %p2802_p1 = scmp.ne.s32.totalorder %s2800_s27, 0  ;;  %p42_p2 = scmp.eq.s32.totalorder %s2214_s16, 0 }
  0x2f   : > { %p2803_p4 = scmp.ne.s32.totalorder %s2210_s15, %s2206_s14  ;;  %p2804_p6 = scmp.eq.s32.totalorder %s2308_s17, 1 }
  0x30   : > { %s2371_s24 = scalar_select %p2802_p1, %s2210_s15, %s34_s28  }
  0x31   : > { %p2379_p8 = por %p2804_p6, %p2803_p4  ;;  %p2015_p9 = scmp.lt.s32.totalorder %s2214_s16, 2 }
  0x32   : > { %s323_s11 = sand.u32 1, %s2210_s15   ;;  %p2806_p12 = pmov %p2803_p4 }
  0x33   : > { %s1841_s12 = sshll.u32 %s323_s11, 3  ;;  %s1842_s18 = sshll.u32 %s2214_s16, 7 }
  0x34   : > { %p43_p13 = por %p42_p2, %p2806_p12  ;;  %s2392_s23 = scalar_lea.hbm %s2778_s0, %s1842_s18 }
  0x35   : > { %s327_s27 = scalar_lea.vmem [#allocation2], %s1841_s12  ;;  %s324_s30 = scalar_lea.sflag [#allocation3], %s323_s11 }
  0x36   : > { %s334_s28 = sshll.u32 %s327_s27, 4  ;;  %p2394_p11 = pnand %p2015_p9, %p43_p13  ;;  %s2398_s28 = int_to_ptr.vmem [resolvable:$true] %s334_s28 }
  0x37   : > { %s2114_s1 = scalar_lea.hbm %s2392_s23, 128  ;;  %s2119_s22 = scalar_lea.hbm %s2778_s0, 256 }
  0x38   : > { %p2115_p0 = scmp.ne.s32.totalorder %s2392_s23, %s2114_s1  ;;  %p2116_p3 = pneg %p2394_p11 }
  0x39   : > { %p2120_p10 = scmp.lt.u32.totalorder %s2392_s23, %s2778_s0  ;;  %p2121_p1 = scmp.lt.u32.totalorder %s2119_s22, %s2114_s1 }
  0x3a   : > { %p2117_p5 = pnand %p2116_p3, %p2115_p0  ;;  %p2123_p4 = scmp.lt.u32.totalorder %s2114_s1, %s2392_s23 }
  0x3b   : > { %p2122_p2 = por %p2121_p1, %p2120_p10 }
  0x3c   : > { %p2118_p7 = pneg %p2117_p5 }
  0x3d   : > { %p2124_p6 = por %p2123_p4, %p2122_p2 }
  0x3f   : > { %p2125_p9 = pnand %p2124_p6, %p2118_p7 }
  0x41   : > { %2128 = shalt.err (!%p2125_p9)
}
  0x42   : > { %s2129_s11 = scalar_lea.vmem %s2398_s28, 128  ;;  %s2217_s18 = smov [#allocation2]  }
  0x43   : > { %p2130_p12 = scmp.ne.s32.totalorder %s2398_s28, %s2129_s11  ;;  %s2134_s12 = sshll.u32 %s2217_s18, 4  ;;  %s2135_s12 = int_to_ptr.vmem [resolvable:$false] %s2134_s12 }
  0x44   : > { %s2136_s26 = scalar_lea.vmem %s2135_s12, 256  ;;  %p2137_p5 = scmp.lt.s32.totalorder %s2398_s28, %s2135_s12 }
  0x45   : > { %p2132_p13 = pnand %p2130_p12, %p2116_p3  ;;  %p2138_p10 = scmp.lt.s32.totalorder %s2136_s26, %s2129_s11 }
  0x47   : > { %p2133_p0 = pneg %p2132_p13  ;;  %p2139_p1 = por %p2138_p10, %p2137_p5 }
  0x49   : > { %p2140_p2 = pnand %p2139_p1, %p2133_p0 }
  0x4b   : > { %2143 = shalt.err (!%p2140_p2)
}
  0x4c   : > { %2009 = dma.hbm_to_vmem [thread:$0]  (!%p2394_p11), %s2392_s23, 128, %s2398_s28, %s324_s30  }
  0x4d   : > { %p2808_p7 = scmp.ne.s32.totalorder %s2797_s21, 0 }
  0x4e   : > { %s2428_s1 = sand.u32 (!%p2808_p7), 1, %s2206_s14   ;;  %p2809_p3 = scmp.ne.s32.totalorder (!%p2808_p7), %s2795_s19, 0 }
  0x4f   : > { %349 = sbr.rel (%p2808_p7) target bundleno = 2821 (0xb05), region = 60  ;;  %s1844_s22 = sshll.u32 (!%p2808_p7), %s2428_s1, 3 }
  0x50   : > { %s352_s27 = scalar_lea.sflag (!%p2808_p7), [#allocation3], %s2428_s1  ;;  %s355_s11 = scalar_lea.vmem (!%p2808_p7), [#allocation2], %s1844_s22 }
  0x56   : > { %2189 = dma.done.wait (%p2809_p3), %s352_s27, 128  }
  0x57   : > { %2191 = vsyncadd (%p2809_p3), %s352_s27, 4294967168  ;;  %p2810_p11 = scmp.eq.s32.totalorder %s2308_s17, 0 }
  0x59   : > { %2193 = dma.done.wait (%p2810_p11), [#allocation6], 128   ;;  %p2811_p4 = pmov %p2810_p11 }
  0x5a   : > { %v2218_v0 = vmov 0.0   ;;  %vm2219_vm0 = vmmov 0   ;;  %v417_v1 = vld [vmem:[%s2781_s3] sm:$0xff]  ;;  %v418_v2 = vld [vmem:[%s2781_s3 + $0x8] sm:$0xff]  ;;  %v419_v3 = vld [vmem:[%s2781_s3 + $0x10] sm:$0xff]  ;;  %vm430_vm1 = vcmask 261120   ;;  %v409_v18 = vlaneseq }
  0x5b   : > { %2195 = vsyncadd (%p2811_p4), [#allocation6], 4294967168  ;;  %1910 = vmatprep.subr.bf16.mxu0 %v2218_v0  ;;  %1914 = vmatprep.mubr.msk.bf16.mxu0 %vm2219_vm0, %v2218_v0  ;;  %v421_v4 = vpack.c.bf16 %v418_v2, %v417_v1  ;;  %v420_v5 = vld [vmem:[%s2781_s3 + $0x18] sm:$0xff]  ;;  %v2460_v7 = vld [vmem:[%s355_s11] sm:$0xff]  ;;  %s2220_s11 = smov 104   ;;  %s2221_s19 = smov 120  }
  0x5c   : > { %1918 = vmatprep.subr.bf16.mxu1 %v2218_v0  ;;  %1920 = vmatprep.mubr.msk.bf16.mxu1 %vm2219_vm0, %v2218_v0  ;;  %v422_v6 = vpack.c.bf16 %v420_v5, %v419_v3  ;;  %v416_v8 = vpack.c.bf16 %v2460_v7, %v2460_v7  ;;  %v1847_v9 = vld [vmem:[%s2782_s4] ss:$0 sm:$0xff]  ;;  %s2222_s21 = smov 96   ;;  %s2223_s23 = smov 112   ;;  %v2224_v19 = vmov 1983009808  }
  0x5d   : > { %1911 = vmatpush3.bf16.msra.mxu0 %v421_v4  ;;  %v487_v20 = vunpack.c.l.s4 %v2224_v19  ;;  %v2487_v21 = vshrl.u32 %v409_v18, 7  ;;  %v2225_v23 = vmov 1934713408   ;;  %vm928_vm2 = vcmask 64512   ;;  %p399_p6 = scmp.lt.s32.totalorder %s2308_s17, 1  ;;  %s2227_s12 = smov 64  }
  0x5e   : > { %1912 = vmatprep.subr.bf16.mxu0 %v2218_v0  ;;  %v519_v24 = vunpack.c.l.s4 %v2225_v23  ;;  %vm1164_vm7 = vcmask 1043456   ;;  %s2228_s30 = smov 16   ;;  %vm1495_vm8 = vcmask 130048   ;;  %vm1497_vm9 = vcmask 195584   ;;  %s1735_s26 = scalar_lea.sflag [#allocation4], %s2428_s1 }
  0x5f   : > { %v488_v22 = vunpack.c.0.s8 %v487_v20  ;;  %s400_s28 = scalar_select %p399_p6, %s2308_s17, 1  ;;  %vm1661_vm10 = vcmask 523264  }
  0x60   : > { %v520_v30 = vunpack.c.0.s8 %v519_v24 }
  0x61   : > { %1913 = vmatpush3.bf16.msra.mxu0 %v422_v6  ;;  %v2494_v27 = vsub.s32 %v488_v22, %v2487_v21  ;;  %s401_s18 = scalar_lea.vmem %s2780_s2, %s400_s28  ;;  %s398_s28 = scalar_lea.vmem [#allocation7], %s1844_s22 }
  0x62   : > { %1924 = vmatprep.subr.bf16.mxu0 %v2218_v0  ;;  %v2505_v37 = vsub.s32 %v520_v30, %v2487_v21  ;;  %s1748_s29 = sshll.u32 %s398_s28, 4  ;;  %s2735_s29 = int_to_ptr.vmem [resolvable:$true] %s1748_s29 }
  0x63   : > { %s2144_s27 = scalar_lea.vmem %s2735_s29, 128 }
  0x64   : > { %1915 = vmatmul.mubr.msk.bf16.vlgmr.msra.gmra.mrb[0].mxu0 %vm430_vm1, %v416_v8  ;;  %p2145_p9 = scmp.ne.s32.totalorder %s2735_s29, %s2144_s27 }
  0x65   : > { %1926 = vmatprep.mubr.msk.bf16.mxu0 %vm2219_vm0, %v2218_v0 }
  0x66   : > { %p2146_p12 = pnand %p2145_p9, %p2379_p8 }
  0x68   : > { %p2147_p13 = pneg %p2146_p12 }
 0x137   : > { %v468_v10 = vpop.f32.mrb[0].mxu0 }
 0x138   : > { %v2472_v11 = vadd.f32 %v1847_v9, %v468_v10  ;;  %v1916_v12 = vpop.f32.mrb[1].mxu0 }
 0x139   : > { %v471_v13 = vpop.f32.mrb[2].mxu0 }
 0x13a   : > { %481 = vrot.lane.b32.xlu1 %v2472_v11, %s2220_s11  ;;  %475 = vrot.lane.b32.xlu0 %v2472_v11, %s2221_s19  ;;  %v1917_v14 = vpop.f32.mrb[3].mxu0 }
 0x13e   : > { %624 = vrot.lane.b32.xlu1 %v2472_v11, %s2222_s21  ;;  %478 = vrot.lane.b32.xlu0 %v2472_v11, %s2223_s23  ;;  %s1877_s23 = sshll.u32 %s2308_s17, 7  ;;  %s2231_s17 = smov [#allocation7]  }
 0x13f   : > { %s2148_s22 = sshll.u32 %s2231_s17, 4  ;;  %s2149_s22 = int_to_ptr.vmem [resolvable:$false] %s2148_s22 }
 0x140   : > { %s2150_s11 = scalar_lea.vmem %s2149_s22, 256  ;;  %p2151_p0 = scmp.lt.s32.totalorder %s2735_s29, %s2149_s22 }
 0x141   : > { %p2152_p5 = scmp.lt.s32.totalorder %s2150_s11, %s2144_s27 }
 0x143   : > { %p2153_p10 = por %p2152_p5, %p2151_p0 }
 0x145   : > { %p2154_p1 = pnand %p2153_p10, %p2147_p13 }
 0x1ac   : > { %v2478_v15 = vpop.permute.xlu0 %475  ;;  %v2481_v16 = vpop.permute.xlu1 %481 }
 0x1ad   : > { %626 = vrot.lane.b32.xlu0 %v2478_v15, %s2222_s21  ;;  %v500_v28 = vcombine.low %v2478_v15, %v2481_v16  ;;  %v501_v29 = vcombine.high %v2478_v15, %v2481_v16 }
 0x1af   : > { %v508_v33 = vrot.slane %v500_v28, %v2494_v27  ;;  %v515_v34 = vrot.slane %v501_v29, %v2494_v27 }
 0x1b0   : > { %v2483_v17 = vpop.permute.xlu0 %478  ;;  %v625_v35 = vpop.permute.xlu1 %624 }
 0x1b1   : > { %630 = vrot.lane.b32.xlu0 %v2481_v16, %s2222_s21  ;;  %628 = vrot.lane.b32.xlu1 %v2483_v17, %s2222_s21  ;;  %v484_v25 = vcombine.low %v2472_v11, %v2483_v17  ;;  %v485_v26 = vcombine.high %v2472_v11, %v2483_v17 }
 0x1b3   : > { %v492_v31 = vrot.slane %v484_v25, %v2494_v27  ;;  %v499_v32 = vrot.slane %v485_v26, %v2494_v27 }
 0x1b5   : > { %v516_v38 = vcombine.low %v492_v31, %v508_v33  ;;  %v517_v39 = vcombine.high %v492_v31, %v508_v33  ;;  %v532_v40 = vcombine.low %v499_v32, %v515_v34  ;;  %v533_v41 = vcombine.high %v499_v32, %v515_v34 }
 0x1b7   : > { %v524_v48 = vrot.slane %v516_v38, %v2505_v37  ;;  %v531_v49 = vrot.slane %v517_v39, %v2505_v37  ;;  %v540_v50 = vrot.slane %v532_v40, %v2505_v37  ;;  %v547_v51 = vrot.slane %v533_v41, %v2505_v37 }
 0x1b9   : > { %v552_v60 = vcombine.low %v524_v48, %v531_v49  ;;  %v1849_v61 = vcombine.high %v524_v48, %v531_v49  ;;  %v568_v62 = vcombine.low %v540_v50, %v547_v51  ;;  %v1850_v63 = vcombine.high %v540_v50, %v547_v51 }
 0x1bb   : > { %v559_v10 = vrot.slane %v552_v60, %v2494_v27  ;;  %v567_v12 = vrot.slane %v1849_v61, %v2494_v27  ;;  %v575_v13 = vrot.slane %v568_v62, %v2494_v27  ;;  %v583_v14 = vrot.slane %v1850_v63, %v2494_v27  ;;  %v406_v61 = vld [vmem:[%s401_s18] sm:$0x1]  ;;  %s2229_s18 = smov 8  }
 0x1bc   : > { %vm407_vm3 = vcmp.ne.f32.partialorder %v406_v61, 0.0  ;;  %v411_v62 = vsub.s32 0, %v2487_v21  ;;  %v2226_v63 = vmov 0  }
 0x1bd   : > { %v584_v30 = vcombine.low %v559_v10, %v567_v12  ;;  %v600_v31 = vcombine.low %v575_v13, %v583_v14 }
 0x1bf   : > { %v592_v39 = vrot.slane %v584_v30, %v2505_v37  ;;  %v608_v40 = vrot.slane %v600_v31, %v2505_v37 }
 0x1c1   : > { %v617_v48 = vcombine.high %v592_v39, %v608_v40 }
 0x21f   : > { %v627_v36 = vpop.permute.xlu0 %626 }
 0x223   : > { %v629_v42 = vpop.permute.xlu1 %628  ;;  %v631_v43 = vpop.permute.xlu0 %630 }
 0x224   : > { %v636_v44 = vcombine.low %v625_v35, %v629_v42  ;;  %v637_v45 = vcombine.high %v625_v35, %v629_v42  ;;  %v652_v46 = vcombine.low %v627_v36, %v631_v43  ;;  %v653_v47 = vcombine.high %v627_v36, %v631_v43 }
 0x226   : > { %v644_v52 = vrot.slane %v636_v44, %v2494_v27  ;;  %v651_v53 = vrot.slane %v637_v45, %v2494_v27  ;;  %v660_v54 = vrot.slane %v652_v46, %v2494_v27  ;;  %v667_v55 = vrot.slane %v653_v47, %v2494_v27 }
 0x227   : > { %v585_v45 = vcombine.high %v559_v10, %v567_v12  ;;  %v601_v46 = vcombine.high %v575_v13, %v583_v14  ;;  %v616_v47 = vcombine.low %v592_v39, %v608_v40 }
 0x228   : > { %v668_v56 = vcombine.low %v644_v52, %v660_v54  ;;  %v669_v57 = vcombine.high %v644_v52, %v660_v54  ;;  %v684_v58 = vcombine.low %v651_v53, %v667_v55  ;;  %v685_v59 = vcombine.high %v651_v53, %v667_v55 }
 0x229   : > { %v620_v51 = vpack.c.bf16 %v616_v47, %v616_v47  ;;  %v621_v52 = vpack.c.bf16 %v617_v48, %v617_v48  ;;  %v599_v53 = vrot.slane %v585_v45, %v2505_v37  ;;  %v615_v54 = vrot.slane %v601_v46, %v2505_v37 }
 0x22a   : > { %v676_v1 = vrot.slane %v668_v56, %v2505_v37  ;;  %v683_v2 = vrot.slane %v669_v57, %v2505_v37  ;;  %v692_v3 = vrot.slane %v684_v58, %v2505_v37  ;;  %v699_v4 = vrot.slane %v685_v59, %v2505_v37 }
 0x22b   : > { %v618_v57 = vcombine.low %v599_v53, %v615_v54  ;;  %v619_v58 = vcombine.high %v599_v53, %v615_v54 }
 0x22c   : > { %v704_v5 = vcombine.low %v676_v1, %v683_v2  ;;  %v1851_v6 = vcombine.high %v676_v1, %v683_v2  ;;  %v720_v8 = vcombine.low %v692_v3, %v699_v4  ;;  %v1852_v9 = vcombine.high %v692_v3, %v699_v4  ;;  %v404_v3 = vld [vmem:[#allocation5] sm:$0xff] }
 0x22d   : > { %v622_v59 = vpack.c.bf16 %v618_v57, %v618_v57  ;;  %v623_v60 = vpack.c.bf16 %v619_v58, %v619_v58  ;;  %v408_v1 = vsel %vm407_vm3, 1, %v2226_v63  ;;  %vm405_vm4 = vcmp.ne.f32.partialorder %v404_v3, 0.0 }
 0x22e   : > { %v711_v18 = vrot.slane %v704_v5, %v2494_v27  ;;  %v719_v19 = vrot.slane %v1851_v6, %v2494_v27  ;;  %v727_v20 = vrot.slane %v720_v8, %v2494_v27  ;;  %v735_v22 = vrot.slane %v1852_v9, %v2494_v27 }
 0x22f   : > { %v412_v2 = vrot.slane %v408_v1, %v411_v62 }
 0x230   : > { %v736_v23 = vcombine.low %v711_v18, %v719_v19  ;;  %v752_v24 = vcombine.low %v727_v20, %v735_v22  ;;  %v737_v25 = vcombine.high %v711_v18, %v719_v19  ;;  %v753_v26 = vcombine.high %v727_v20, %v735_v22 }
 0x231   : > { %vm413_vm5 = vcmp.eq.s32.totalorder %v412_v2, 1 }
 0x232   : > { %v744_v28 = vrot.slane %v736_v23, %v2505_v37  ;;  %v760_v29 = vrot.slane %v752_v24, %v2505_v37  ;;  %v751_v34 = vrot.slane %v737_v25, %v2505_v37  ;;  %v767_v35 = vrot.slane %v753_v26, %v2505_v37  ;;  %vm414_vm6 = vmor %vm405_vm4, %vm413_vm5 }
 0x233   : > { %v415_v4 = vsel %vm414_vm6, -inf, %v2218_v0 }
 0x234   : > { %v768_v32 = vcombine.low %v744_v28, %v760_v29  ;;  %v769_v33 = vcombine.high %v744_v28, %v760_v29  ;;  %v770_v43 = vcombine.low %v751_v34, %v767_v35  ;;  %v771_v44 = vcombine.high %v751_v34, %v767_v35 }
 0x236   : > { %v772_v36 = vpack.c.bf16 %v768_v32, %v768_v32  ;;  %v773_v38 = vpack.c.bf16 %v769_v33, %v769_v33  ;;  %v774_v49 = vpack.c.bf16 %v770_v43, %v770_v43  ;;  %v775_v50 = vpack.c.bf16 %v771_v44, %v771_v44 }
 0x238   : > { %v933_v41 = vsel %vm928_vm2, %v772_v36, 0  ;;  %v979_v42 = vsel %vm928_vm2, %v773_v38, 0  ;;  %v1025_v55 = vsel %vm928_vm2, %v774_v49, 0  ;;  %v1071_v56 = vsel %vm928_vm2, %v775_v50, 0 }
 0x239   : > { %1919 = vmatpush3.bf16.xpose.msra.mxu1 %v933_v41  ;;  %1925 = vmatpush3.bf16.xpose.msra.mxu0 %v979_v42 }
 0x23a   : > { %1930 = vmatprep.subr.bf16.mxu1 %v2218_v0  ;;  %1936 = vmatprep.subr.bf16.mxu0 %v2218_v0 }
 0x240   : > { %1921 = vmatmul.mubr.msk.bf16.vlgmr.msra.gmra.mrb[0].mxu1 %vm928_vm2, %v620_v51  ;;  %1927 = vmatmul.mubr.msk.bf16.vlgmr.msra.gmra.mrb[4].mxu0 %vm928_vm2, %v621_v52 }
 0x241   : > { %1931 = vmatpush3.bf16.xpose.msra.mxu1 %v1025_v55  ;;  %1937 = vmatpush3.bf16.xpose.msra.mxu0 %v1071_v56 }
 0x242   : > { %1932 = vmatprep.mubr.msk.bf16.mxu1 %vm2219_vm0, %v2218_v0  ;;  %1938 = vmatprep.mubr.msk.bf16.mxu0 %vm2219_vm0, %v2218_v0 }
 0x243   : > { %1942 = vmatprep.subr.bf16.mxu1 %v2218_v0  ;;  %1948 = vmatprep.subr.bf16.mxu0 %v2218_v0 }
 0x248   : > { %1933 = vmatmul.mubr.msk.bf16.vlgmr.msra.gmra.mrb[4].mxu1 %vm928_vm2, %v622_v59  ;;  %1939 = vmatmul.mubr.msk.bf16.vlgmr.msra.gmra.mrb[8].mxu0 %vm928_vm2, %v623_v60 }
 0x249   : > { %1944 = vmatprep.mubr.msk.bf16.mxu1 %vm2219_vm0, %v2218_v0  ;;  %1950 = vmatprep.mubr.msk.bf16.mxu0 %vm2219_vm0, %v2218_v0 }
 0x313   : > { %v969_v5 = vpop.f32.mrb[0].mxu1  ;;  %v1015_v6 = vpop.f32.mrb[4].mxu0 }
 0x314   : > { %v970_v8 = vadd.f32 %v969_v5, %v415_v4  ;;  %v1016_v9 = vadd.f32 %v1015_v6, %v415_v4  ;;  %v1922_v10 = vpop.f32.mrb[1].mxu1  ;;  %v1928_v12 = vpop.f32.mrb[5].mxu0 }
 0x315   : > { %v972_v13 = vpop.f32.mrb[2].mxu1  ;;  %v1018_v14 = vpop.f32.mrb[6].mxu0 }
 0x316   : > { %v1923_v18 = vpop.f32.mrb[3].mxu1  ;;  %v1929_v19 = vpop.f32.mrb[7].mxu0  ;;  %v1113_v21 = vsel %vm928_vm2, %v970_v8, -inf  ;;  %v1116_v20 = vsel %vm928_vm2, %v1016_v9, -inf }
 0x317   : > { %1114 = vmax.xlane.f32.xlu1 %v1113_v21  ;;  %1117 = vmax.xlane.f32.xlu0 %v1116_v20 }
 0x31b   : > { %v1061_v22 = vpop.f32.mrb[4].mxu1  ;;  %v1107_v23 = vpop.f32.mrb[8].mxu0 }
 0x31c   : > { %v1062_v24 = vadd.f32 %v1061_v22, %v415_v4  ;;  %v1108_v25 = vadd.f32 %v1107_v23, %v415_v4  ;;  %v1934_v26 = vpop.f32.mrb[5].mxu1  ;;  %v1940_v28 = vpop.f32.mrb[9].mxu0 }
 0x31d   : > { %v1064_v29 = vpop.f32.mrb[6].mxu1  ;;  %v1110_v30 = vpop.f32.mrb[10].mxu0 }
 0x31e   : > { %v1935_v31 = vpop.f32.mrb[7].mxu1  ;;  %v1941_v32 = vpop.f32.mrb[11].mxu0  ;;  %v1119_v33 = vsel %vm928_vm2, %v1062_v24, -inf  ;;  %v1122_v34 = vsel %vm928_vm2, %v1108_v25, -inf }
 0x31f   : > { %1120 = vmax.xlane.f32.xlu0 %v1119_v33  ;;  %1123 = vmax.xlane.f32.xlu1 %v1122_v34 }
 0x330   : > { %778 = vrot.lane.b32.xlu1 %v2478_v15, %s2227_s12 }
 0x335   : > { %776 = vrot.lane.b32.xlu0 %v2472_v11, %s2227_s12 }
 0x3a4   : > { %v1115_v35 = vpop.xlane.xlu1 %1114  ;;  %v1118_v36 = vpop.xlane.xlu0 %1117 }
 0x3a5   : > { %v1125_v38 = vsub.f32 %v970_v8, %v1115_v35  ;;  %v1126_v39 = vsub.f32 %v1016_v9, %v1118_v36 }
 0x3a7   : > { %v1129_v40 = vmul.f32 1.442695, %v1125_v38  ;;  %v1131_v41 = vmul.f32 1.442695, %v1126_v39 }
 0x3a9   : > { %2064 = vpow2.f32 %v1129_v40 }
 0x3aa   : > { %2066 = vpow2.f32 %v1131_v41 }
 0x3ac   : > { %v1124_v11 = vpop.xlane.xlu1 %1123  ;;  %v1121_v45 = vpop.xlane.xlu0 %1120 }
 0x3ad   : > { %v1128_v46 = vsub.f32 %v1108_v25, %v1124_v11  ;;  %v1127_v47 = vsub.f32 %v1062_v24, %v1121_v45 }
 0x3af   : > { %v1135_v48 = vmul.f32 1.442695, %v1128_v46  ;;  %v1133_v49 = vmul.f32 1.442695, %v1127_v47 }
 0x3b0   : > { %v779_v53 = vpop.permute.xlu1 %778 }
 0x3b1   : > { %2068 = vpow2.f32 %v1135_v48 }
 0x3b2   : > { %2070 = vpow2.f32 %v1133_v49 }
 0x3b3   : > { %v2568_v42 = vpop.eup %2064 }
 0x3b4   : > { %v2570_v43 = vpop.eup %2066  ;;  %v1137_v44 = vsel %vm928_vm2, %v2568_v42, 0.0 }
 0x3b5   : > { %1138 = vadd.xlane.f32.xlu0 %v1137_v44  ;;  %v1140_v15 = vsel %vm928_vm2, %v2570_v43, 0.0 }
 0x3b6   : > { %1141 = vadd.xlane.f32.xlu1 %v1140_v15 }
 0x3bb   : > { %v2578_v50 = vpop.eup %2068 }
 0x3bc   : > { %v2580_v51 = vpop.eup %2070  ;;  %v1146_v52 = vsel %vm928_vm2, %v2578_v50, 0.0 }
 0x3c7   : > { %780 = vrot.lane.b32.xlu1 %v2483_v17, %s2227_s12  ;;  %v1143_v17 = vsel %vm928_vm2, %v2580_v51, 0.0 }
 0x3cb   : > { %782 = vrot.lane.b32.xlu0 %v2481_v16, %s2227_s12  ;;  %v777_v16 = vpop.permute.xlu0 %776  ;;  %s2230_s12 = smov 24  }
 0x3ea   : > { %1147 = vadd.xlane.f32.xlu0 %v1146_v52 }
 0x3eb   : > { %1144 = vadd.xlane.f32.xlu1 %v1143_v17 }
 0x442   : > { %v1139_v54 = vpop.xlane.xlu0 %1138 }
 0x443   : > { %v1142_v55 = vpop.xlane.xlu1 %1141  ;;  %2072 = vrcp.f32 %v1139_v54 }
 0x444   : > { %2074 = vrcp.f32 %v1142_v55 }
 0x446   : > { %v783_v56 = vpop.permute.xlu0 %782 }
 0x447   : > { %v804_v57 = vcombine.low %v779_v53, %v783_v56  ;;  %v805_v58 = vcombine.high %v779_v53, %v783_v56  ;;  %v781_v59 = vpop.permute.xlu1 %780 }
 0x448   : > { %v788_v60 = vcombine.low %v777_v16, %v781_v59  ;;  %v789_v61 = vcombine.high %v777_v16, %v781_v59 }
 0x449   : > { %v812_v62 = vrot.slane %v804_v57, %v2494_v27  ;;  %v819_v63 = vrot.slane %v805_v58, %v2494_v27 }
 0x44a   : > { %v796_v1 = vrot.slane %v788_v60, %v2494_v27  ;;  %v803_v2 = vrot.slane %v789_v61, %v2494_v27 }
 0x44c   : > { %v820_v3 = vcombine.low %v796_v1, %v812_v62  ;;  %v821_v4 = vcombine.high %v796_v1, %v812_v62  ;;  %v836_v5 = vcombine.low %v803_v2, %v819_v63  ;;  %v837_v6 = vcombine.high %v803_v2, %v819_v63 }
 0x44d   : > { %v2073_v31 = vpop.eup %2072 }
 0x44e   : > { %v828_v8 = vrot.slane %v820_v3, %v2505_v37  ;;  %v835_v9 = vrot.slane %v821_v4, %v2505_v37  ;;  %v844_v10 = vrot.slane %v836_v5, %v2505_v37  ;;  %v851_v12 = vrot.slane %v837_v6, %v2505_v37  ;;  %v2075_v34 = vpop.eup %2074 }
 0x44f   : > { %v1153_v40 = vmul.f32 %v2073_v31, %v2568_v42  ;;  %v1154_v41 = vmul.f32 %v2075_v34, %v2570_v43  ;;  %v1502_v34 = vld [vmem:[%s2783_s5 + $0x10] sm:$0xff] }
 0x450   : > { %v856_v13 = vcombine.low %v828_v8, %v835_v9  ;;  %v1853_v14 = vcombine.high %v828_v8, %v835_v9  ;;  %v872_v18 = vcombine.low %v844_v10, %v851_v12  ;;  %v1854_v19 = vcombine.high %v844_v10, %v851_v12 }
 0x451   : > { %v1157_v48 = vpack.c.bf16 %v1153_v40, %v1153_v40  ;;  %v1158_v49 = vpack.c.bf16 %v1154_v41, %v1154_v41 }
 0x452   : > { %v863_v21 = vrot.slane %v856_v13, %v2494_v27  ;;  %v871_v20 = vrot.slane %v1853_v14, %v2494_v27  ;;  %v879_v22 = vrot.slane %v872_v18, %v2494_v27  ;;  %v887_v23 = vrot.slane %v1854_v19, %v2494_v27 }
 0x454   : > { %v888_v24 = vcombine.low %v863_v21, %v871_v20  ;;  %v889_v25 = vcombine.high %v863_v21, %v871_v20  ;;  %v904_v26 = vcombine.low %v879_v22, %v887_v23  ;;  %v905_v28 = vcombine.high %v879_v22, %v887_v23  ;;  %v1500_v22 = vld [vmem:[%s2783_s5] sm:$0xff]  ;;  %v1501_v23 = vld [vmem:[%s2783_s5 + $0x8] sm:$0xff] }
 0x456   : > { %v896_v29 = vrot.slane %v888_v24, %v2505_v37  ;;  %v903_v30 = vrot.slane %v889_v25, %v2505_v37  ;;  %v912_v32 = vrot.slane %v904_v26, %v2505_v37  ;;  %v919_v33 = vrot.slane %v905_v28, %v2505_v37 }
 0x458   : > { %v920_v35 = vcombine.low %v896_v29, %v912_v32  ;;  %v921_v36 = vcombine.high %v896_v29, %v912_v32  ;;  %v922_v38 = vcombine.low %v903_v30, %v919_v33  ;;  %v923_v39 = vcombine.high %v903_v30, %v919_v33 }
 0x459   : > { %v1504_v29 = vpack.c.bf16 %v1501_v23, %v1500_v22  ;;  %v1867_v23 = vld [vmem:[%s2787_s9 + $0x1] ss:$0 sm:$0xff] }
 0x45a   : > { %v924_v44 = vpack.c.bf16 %v920_v35, %v920_v35  ;;  %v925_v15 = vpack.c.bf16 %v921_v36, %v921_v36  ;;  %v926_v46 = vpack.c.bf16 %v922_v38, %v922_v38  ;;  %v927_v47 = vpack.c.bf16 %v923_v39, %v923_v39  ;;  %v1503_v35 = vld [vmem:[%s2783_s5 + $0x18] sm:$0xff] }
 0x45b   : > { %v1505_v41 = vpack.c.bf16 %v1503_v35, %v1502_v34  ;;  %v1647_v34 = vld [vmem:[%s2786_s8 + $0x18] sm:$0xff] }
 0x45c   : > { %v1166_v11 = vsel %vm1164_vm7, %v924_v44, 0  ;;  %v1212_v45 = vsel %vm1164_vm7, %v925_v15, 0  ;;  %v1258_v42 = vsel %vm1164_vm7, %v926_v46, 0  ;;  %v1304_v43 = vsel %vm1164_vm7, %v927_v47, 0 }
 0x45d   : > { %1943 = vmatpush3.bf16.msra.mxu1 %v1166_v11  ;;  %1949 = vmatpush3.bf16.msra.mxu0 %v1212_v45 }
 0x45e   : > { %1954 = vmatprep.subr.bf16.mxu1 %v2218_v0  ;;  %1960 = vmatprep.subr.bf16.mxu0 %v2218_v0 }
 0x460   : > { %1945 = vmatmul.mubr.msk.bf16.vlgmr.msra.gmra.mrb[8].mxu1 %vm928_vm2, %v1157_v48  ;;  %1951 = vmatmul.mubr.msk.bf16.vlgmr.msra.gmra.mrb[12].mxu0 %vm928_vm2, %v1158_v49 }
 0x461   : > { %1955 = vmatpush3.bf16.msra.mxu1 %v1258_v42  ;;  %1961 = vmatpush3.bf16.msra.mxu0 %v1304_v43 }
 0x462   : > { %1956 = vmatprep.mubr.msk.bf16.mxu1 %vm2219_vm0, %v2218_v0  ;;  %1962 = vmatprep.mubr.msk.bf16.mxu0 %vm2219_vm0, %v2218_v0 }
 0x463   : > { %1966 = vmatprep.subr.bf16.mxu1 %v2218_v0  ;;  %1974 = vmatprep.subr.bf16.mxu0 %v2218_v0 }
 0x477   : > { %v1148_v52 = vpop.xlane.xlu0 %1147 }
 0x478   : > { %2076 = vrcp.f32 %v1148_v52  ;;  %v1145_v17 = vpop.xlane.xlu1 %1144 }
 0x479   : > { %2078 = vrcp.f32 %v1145_v17 }
 0x482   : > { %v2077_v16 = vpop.eup %2076 }
 0x483   : > { %v2079_v53 = vpop.eup %2078  ;;  %v1156_v54 = vmul.f32 %v2077_v16, %v2578_v50 }
 0x484   : > { %v1155_v55 = vmul.f32 %v2079_v53, %v2580_v51 }
 0x485   : > { %v1160_v56 = vpack.c.bf16 %v1156_v54, %v1156_v54 }
 0x486   : > { %v1159_v57 = vpack.c.bf16 %v1155_v55, %v1155_v55 }
 0x487   : > { %1963 = vmatmul.mubr.msk.bf16.vlgmr.msra.gmra.mrb[16].mxu0 %vm928_vm2, %v1160_v56 }
 0x488   : > { %1957 = vmatmul.mubr.msk.bf16.vlgmr.msra.gmra.mrb[12].mxu1 %vm928_vm2, %v1159_v57  ;;  %1978 = vmatprep.mubr.msk.bf16.mxu0 %vm2219_vm0, %v2218_v0 }
 0x489   : > { %1970 = vmatprep.mubr.msk.bf16.mxu1 %vm2219_vm0, %v2218_v0  ;;  %1967 = vmatpush3.bf16.msra.mxu1 %v1504_v29 }
 0x48a   : > { %1968 = vmatprep.subr.bf16.mxu1 %v2218_v0 }
 0x48d   : > { %1969 = vmatpush3.bf16.msra.mxu1 %v1505_v41  ;;  %v1651_v41 = vld [vmem:[%s2786_s8 + $0x38] sm:$0xff] }
 0x48e   : > { %1982 = vmatprep.subr.bf16.mxu1 %v2218_v0 }
 0x533   : > { %v1202_v58 = vpop.f32.mrb[8].mxu1  ;;  %v1248_v59 = vpop.f32.mrb[12].mxu0 }
 0x534   : > { %v1946_v60 = vpop.f32.mrb[9].mxu1  ;;  %v1952_v61 = vpop.f32.mrb[13].mxu0 }
 0x535   : > { %v1205_v62 = vpop.f32.mrb[10].mxu1  ;;  %v1251_v50 = vpop.f32.mrb[14].mxu0  ;;  %v1865_v61 = vld [vmem:[%s2787_s9] ss:$0 sm:$0xff] }
 0x536   : > { %v1947_v63 = vpop.f32.mrb[11].mxu1  ;;  %v1953_v51 = vpop.f32.mrb[15].mxu0 }
 0x55a   : > { %v1340_v1 = vpop.f32.mrb[16].mxu0 }
 0x55b   : > { %v1294_v2 = vpop.f32.mrb[12].mxu1  ;;  %v1362_v3 = vcombine.low %v1248_v59, %v1340_v1  ;;  %v1363_v4 = vcombine.high %v1248_v59, %v1340_v1  ;;  %v1964_v5 = vpop.f32.mrb[17].mxu0 }
 0x55c   : > { %v1346_v6 = vcombine.low %v1202_v58, %v1294_v2  ;;  %v1347_v8 = vcombine.high %v1202_v58, %v1294_v2  ;;  %v1958_v9 = vpop.f32.mrb[13].mxu1  ;;  %v1343_v10 = vpop.f32.mrb[18].mxu0 }
 0x55d   : > { %v1370_v12 = vrot.slane %v1362_v3, %v2494_v27  ;;  %v1377_v13 = vrot.slane %v1363_v4, %v2494_v27  ;;  %v1297_v14 = vpop.f32.mrb[14].mxu1  ;;  %v1965_v18 = vpop.f32.mrb[19].mxu0  ;;  %v1582_v10 = vld [vmem:[%s2784_s6] sm:$0xff] }
 0x55e   : > { %v1354_v19 = vrot.slane %v1346_v6, %v2494_v27  ;;  %v1361_v21 = vrot.slane %v1347_v8, %v2494_v27  ;;  %v1959_v20 = vpop.f32.mrb[15].mxu1  ;;  %v1585_v14 = vld [vmem:[%s2784_s6 + $0x18] sm:$0xff] }
 0x560   : > { %v1378_v24 = vcombine.low %v1354_v19, %v1370_v12  ;;  %v1379_v25 = vcombine.high %v1354_v19, %v1370_v12  ;;  %v1394_v26 = vcombine.low %v1361_v21, %v1377_v13  ;;  %v1395_v28 = vcombine.high %v1361_v21, %v1377_v13  ;;  %v1583_v12 = vld [vmem:[%s2784_s6 + $0x8] sm:$0xff] }
 0x561   : > { %v1586_v13 = vpack.c.bf16 %v1583_v12, %v1582_v10 }
 0x562   : > { %v1386_v30 = vrot.slane %v1378_v24, %v2505_v37  ;;  %v1393_v31 = vrot.slane %v1379_v25, %v2505_v37  ;;  %v1402_v32 = vrot.slane %v1394_v26, %v2505_v37  ;;  %v1409_v33 = vrot.slane %v1395_v28, %v2505_v37  ;;  %v1868_v25 = vld [vmem:[%s2787_s9 + $0x2] ss:$0 sm:$0xff] }
 0x563   : > { %1975 = vmatpush3.bf16.msra.mxu0 %v1586_v13 }
 0x564   : > { %v1414_v36 = vcombine.low %v1386_v30, %v1393_v31  ;;  %v1863_v38 = vcombine.high %v1386_v30, %v1393_v31  ;;  %v1430_v39 = vcombine.low %v1402_v32, %v1409_v33  ;;  %v1864_v40 = vcombine.high %v1402_v32, %v1409_v33  ;;  %1976 = vmatprep.subr.bf16.mxu0 %v2218_v0  ;;  %v1644_v30 = vld [vmem:[%s2786_s8] sm:$0xff]  ;;  %v1645_v31 = vld [vmem:[%s2786_s8 + $0x8] sm:$0xff]  ;;  %v1646_v33 = vld [vmem:[%s2786_s8 + $0x10] sm:$0xff] }
 0x565   : > { %v1652_v32 = vpack.c.bf16 %v1645_v31, %v1644_v30  ;;  %v1653_v35 = vpack.c.bf16 %v1647_v34, %v1646_v33 }
 0x566   : > { %v1421_v44 = vrot.slane %v1414_v36, %v2494_v27  ;;  %v1429_v15 = vrot.slane %v1863_v38, %v2494_v27  ;;  %v1437_v11 = vrot.slane %v1430_v39, %v2494_v27  ;;  %v1445_v45 = vrot.slane %v1864_v40, %v2494_v27  ;;  %v1648_v36 = vld [vmem:[%s2786_s8 + $0x20] sm:$0xff]  ;;  %v1649_v38 = vld [vmem:[%s2786_s8 + $0x28] sm:$0xff]  ;;  %v1650_v40 = vld [vmem:[%s2786_s8 + $0x30] sm:$0xff] }
 0x567   : > { %v1654_v39 = vpack.c.bf16 %v1649_v38, %v1648_v36 }
 0x568   : > { %v1447_v46 = vcombine.high %v1421_v44, %v1429_v15  ;;  %v1463_v47 = vcombine.high %v1437_v11, %v1445_v45  ;;  %v1446_v48 = vcombine.low %v1421_v44, %v1429_v15  ;;  %v1462_v49 = vcombine.low %v1437_v11, %v1445_v45  ;;  %v1869_v15 = vld [vmem:[%s2785_s7] ss:$0 sm:$0xff] }
 0x569   : > { %v1655_v44 = vpack.c.bf16 %v1651_v41, %v1650_v40 }
 0x56a   : > { %v1461_v42 = vrot.slane %v1447_v46, %v2505_v37  ;;  %v1477_v43 = vrot.slane %v1463_v47, %v2505_v37  ;;  %v1454_v52 = vrot.slane %v1446_v48, %v2505_v37  ;;  %v1470_v17 = vrot.slane %v1462_v49, %v2505_v37 }
 0x56c   : > { %v1480_v16 = vcombine.low %v1461_v42, %v1477_v43  ;;  %v1479_v53 = vcombine.high %v1454_v52, %v1470_v17  ;;  %v1481_v54 = vcombine.high %v1461_v42, %v1477_v43  ;;  %v1478_v55 = vcombine.low %v1454_v52, %v1470_v17 }
 0x56e   : > { %1487 = vrot.lane.b32.xlu1 %v1480_v16, %s2228_s30  ;;  %1483 = vrot.lane.b32.xlu0 %v1479_v53, %s2229_s18  ;;  %v1871_v16 = vld [vmem:[%s2787_s9 + $0x3] ss:$0 sm:$0xff] }
 0x572   : > { %1491 = vrot.lane.b32.xlu1 %v1481_v54, %s2230_s12  ;;  %s2733_s12 = scalar_lea.hbm %s2788_s10, %s1877_s23 }
 0x5e0   : > { %v1488_v27 = vpop.permute.xlu1 %1487  ;;  %v1484_v56 = vpop.permute.xlu0 %1483 }
 0x5e1   : > { %v1494_v57 = vsel %vm928_vm2, %v1478_v55, %v1484_v56 }
 0x5e2   : > { %v1496_v59 = vsel %vm1495_vm8, %v1494_v57, %v1488_v27 }
 0x5e4   : > { %v1492_v58 = vpop.permute.xlu1 %1491 }
 0x5e5   : > { %v1498_v60 = vsel %vm1497_vm9, %v1496_v59, %v1492_v58 }
 0x5e6   : > { %v1499_v37 = vpack.c.bf16 %v1498_v60, %v1498_v60 }
 0x5e8   : > { %1971 = vmatmul.mubr.msk.bf16.vlgmr.msra.gmra.mrb[16].mxu1 %vm430_vm1, %v1499_v37 }
 0x5e9   : > { %1990 = vmatprep.mubr.msk.bf16.mxu1 %vm2219_vm0, %v2218_v0  ;;  %1983 = vmatpush3.bf16.msra.mxu1 %v1652_v32 }
 0x5ea   : > { %1984 = vmatprep.subr.bf16.mxu1 %v2218_v0 }
 0x5ed   : > { %1985 = vmatpush3.bf16.msra.mxu1 %v1653_v35 }
 0x5ee   : > { %1986 = vmatprep.subr.bf16.mxu1 %v2218_v0 }
 0x5f1   : > { %1987 = vmatpush3.bf16.msra.mxu1 %v1654_v39 }
 0x5f2   : > { %1988 = vmatprep.subr.bf16.mxu1 %v2218_v0 }
 0x5f5   : > { %1989 = vmatpush3.bf16.msra.mxu1 %v1655_v44 }
 0x6bb   : > { %v1548_v62 = vpop.f32.mrb[16].mxu1 }
 0x6bc   : > { %v1549_v50 = vadd.f32 %v1865_v61, %v1548_v62  ;;  %v1972_v63 = vpop.f32.mrb[17].mxu1 }
 0x6bd   : > { %v1551_v51 = vpop.f32.mrb[18].mxu1 }
 0x6be   : > { %v1973_v1 = vpop.f32.mrb[19].mxu1  ;;  %v1554_v2 = vadd.f32 %v1549_v50, %v2460_v7  ;;  %v1584_v7 = vld [vmem:[%s2784_s6 + $0x10] sm:$0xff] }
 0x6bf   : > { %v1587_v18 = vpack.c.bf16 %v1585_v14, %v1584_v7 }
 0x6c0   : > { %v1555_v3 = vsel %vm430_vm1, %v1554_v2, 0.0 }
 0x6c1   : > { %1556 = vadd.xlane.f32.xlu0 %v1555_v3  ;;  %1977 = vmatpush3.bf16.msra.mxu0 %v1587_v18 }
 0x74e   : > { %v1557_v4 = vpop.xlane.xlu0 %1556 }
 0x74f   : > { %v1559_v5 = vmul.f32 0.03125, %v1557_v4  ;;  %v1874_v4 = vld [vmem:[%s2787_s9 + $0x5] ss:$0 sm:$0xff] }
 0x751   : > { %v1560_v6 = vsub.f32 %v1554_v2, %v1559_v5  ;;  %v1873_v2 = vld [vmem:[%s2787_s9 + $0x4] ss:$0 sm:$0xff] }
 0x753   : > { %v1561_v8 = vmul.f32 %v1560_v6, %v1560_v6 }
 0x755   : > { %v1562_v9 = vsel %vm430_vm1, %v1561_v8, 0.0 }
 0x756   : > { %1563 = vadd.xlane.f32.xlu1 %v1562_v9 }
 0x7e3   : > { %v1564_v19 = vpop.xlane.xlu1 %1563 }
 0x7e4   : > { %v1565_v21 = vmul.f32 0.03125, %v1564_v19 }
 0x7e6   : > { %v1566_v20 = vadd.f32 1e-05, %v1565_v21 }
 0x7e8   : > { %2080 = vrsqrt.f32 %v1566_v20 }
 0x7f2   : > { %v2081_v22 = vpop.eup %2080 }
 0x7f3   : > { %v1568_v24 = vmul.f32 %v2081_v22, %v1560_v6 }
 0x7f5   : > { %v1574_v26 = vmul.f32 %v1867_v23, %v1568_v24 }
 0x7f7   : > { %v1580_v28 = vadd.f32 %v1868_v25, %v1574_v26 }
 0x7f9   : > { %v1581_v29 = vpack.c.bf16 %v1580_v28, %v1580_v28 }
 0x7fb   : > { %1979 = vmatmul.mubr.msk.bf16.vlgmr.msra.gmra.mrb[20].mxu0 %vm430_vm1, %v1581_v29 }
 0x8ce   : > { %v1632_v11 = vpop.f32.mrb[20].mxu0 }
 0x8cf   : > { %v1633_v45 = vadd.f32 %v1869_v15, %v1632_v11  ;;  %v1980_v46 = vpop.f32.mrb[21].mxu0 }
 0x8d0   : > { %v1635_v47 = vpop.f32.mrb[22].mxu0 }
 0x8d1   : > { %v1639_v48 = vmul.f32 0.70710677, %v1633_v45  ;;  %v1981_v0 = vpop.f32.mrb[23].mxu0  ;;  %v1638_v42 = vmul.f32 0.5, %v1633_v45 }
 0x8d3   : > { %2082 = verf.f32 %v1639_v48 }
 0x8dd   : > { %v2083_v49 = vpop.eup %2082 }
 0x8de   : > { %v1641_v43 = vadd.f32 1.0, %v2083_v49 }
 0x8e0   : > { %v1642_v52 = vmul.f32 %v1641_v43, %v1638_v42 }
 0x8e2   : > { %v1643_v17 = vpack.c.bf16 %v1642_v52, %v1642_v52 }
 0x8e4   : > { %1991 = vmatmul.mubr.msk.bf16.vlgmr.msra.gmra.mrb[20].mxu1 %vm1661_vm10, %v1643_v17 }
 0x9b7   : > { %v1699_v53 = vpop.f32.mrb[20].mxu1 }
 0x9b8   : > { %v1700_v54 = vadd.f32 %v1871_v16, %v1699_v53  ;;  %v1992_v55 = vpop.f32.mrb[21].mxu1 }
 0x9b9   : > { %v1702_v27 = vpop.f32.mrb[22].mxu1 }
 0x9ba   : > { %v1993_v56 = vpop.f32.mrb[23].mxu1  ;;  %v1705_v57 = vadd.f32 %v1700_v54, %v1580_v28 }
 0x9bc   : > { %v1706_v58 = vsel %vm430_vm1, %v1705_v57, 0.0 }
 0x9bd   : > { %1707 = vadd.xlane.f32.xlu0 %v1706_v58 }
 0xa4a   : > { %v1708_v59 = vpop.xlane.xlu0 %1707 }
 0xa4b   : > { %v1709_v60 = vmul.f32 0.03125, %v1708_v59 }
 0xa4d   : > { %v1710_v37 = vsub.f32 %v1705_v57, %v1709_v60 }
 0xa4f   : > { %v1711_v61 = vmul.f32 %v1710_v37, %v1710_v37 }
 0xa51   : > { %v1712_v62 = vsel %vm430_vm1, %v1711_v61, 0.0 }
 0xa52   : > { %1713 = vadd.xlane.f32.xlu0 %v1712_v62 }
 0xadf   : > { %v1714_v50 = vpop.xlane.xlu0 %1713 }
 0xae0   : > { %v1715_v63 = vmul.f32 0.03125, %v1714_v50 }
 0xae2   : > { %v1716_v51 = vadd.f32 1e-05, %v1715_v63 }
 0xae4   : > { %2084 = vrsqrt.f32 %v1716_v51 }
 0xaee   : > { %v2085_v1 = vpop.eup %2084 }
 0xaef   : > { %v1718_v3 = vmul.f32 %v2085_v1, %v1710_v37 }
 0xaf1   : > { %v1724_v5 = vmul.f32 %v1873_v2, %v1718_v3 }
 0xaf3   : > { %v1730_v6 = vadd.f32 %v1874_v4, %v1724_v5 }
 0xaf5   : > { %v1875_v8 = vclamps-f32 %v1730_v6, 3.4028235e+38 }
 0xaf7   : > { %1733 = vst.msk [vmem:[%s398_s28] sm:$0xff] %vm430_vm1, %v1875_v8 }
 0xaf8   : > { %2157 = shalt.err (!%p2154_p1)
}
 0xaf9   : > { %s2158_s1 = scalar_lea.hbm %s2733_s12, 128  ;;  %s2162_s23 = scalar_lea.hbm %s2788_s10, 256 }
 0xafa   : > { %p2159_p2 = scmp.ne.s32.totalorder %s2733_s12, %s2158_s1  ;;  %p2163_p11 = scmp.lt.u32.totalorder %s2733_s12, %s2788_s10 }
 0xafb   : > { %p2164_p4 = scmp.lt.u32.totalorder %s2162_s23, %s2158_s1  ;;  %p2166_p9 = scmp.lt.u32.totalorder %s2158_s1, %s2733_s12 }
 0xafc   : > { %p2160_p7 = pnand %p2159_p2, %p2379_p8 }
 0xafd   : > { %p2165_p6 = por %p2164_p4, %p2163_p11 }
 0xafe   : > { %p2161_p3 = pneg %p2160_p7 }
 0xaff   : > { %p2167_p12 = por %p2166_p9, %p2165_p6 }
 0xb01   : > { %p2168_p13 = pnand %p2167_p12, %p2161_p3 }
 0xb03   : > { %2171 = shalt.err (!%p2168_p13)
}
 0xb04   : > { %2000 = dma.vmem_to_hbm [thread:$0]  (%p2379_p8), %s2735_s29, 128, %s2733_s12, %s1735_s26  }
 0xb05 PF: > { %s1760_s18 = sand.u32 1, %s2202_s13   ;;  %p2812_p0 = scmp.ne.s32.totalorder %s2796_s20, 0 }
 0xb06   : > { %p2813_p5 = scmp.ge.s32.totalorder %s2214_s16, 2  ;;  %s1761_s27 = scalar_lea.sflag [#allocation4], %s1760_s18 }
 0xb08   : > { %p2011_p10 = pnand %p2813_p5, %p2812_p0 }
 0xb0a   : > { %2197 = dma.done.wait (!%p2011_p10), %s1761_s27, 128  }
 0xb0b   : > { %2199 = vsyncadd (!%p2011_p10), %s1761_s27, 4294967168  ;;  %s2814_s16 = sld [smem:[#allocation11_spill]]  ;;  %s2815_s13 = smov %s2206_s14 }
 0xb0c   : > { %s2816_s14 = smov %s2210_s15  ;;  %s2817_s15 = smov %s2371_s24 }
 0xb11   : > { %p24_p1 = scmp.ge.s32.totalorder %s2814_s16, 4  }
 0xb13   :  { %26 = sbr.rel (!%p24_p1) target bundleno = 8 (0x8), region = 112 }
 0xb1a   :  { %1766 = vsyncpa [#allocation3], 1 }
 0xb1b   :  { %1768 = vsyncpa [#allocation3 + $0x1], 1 }
 0xb1c   :  { %1769 = vsyncpa [#allocation6], 1 }
 0xb1d   :  { %1770 = vsyncpa [#allocation4], 1 }
 0xb1e   :  { %1772 = vsyncpa [#allocation4 + $0x1], 1 }

</bundles_post_ra>
